<compile_context>
chip_gen: v6e
topology: v6e:2x2x1
jax: 0.10.0
libtpu: 0.0.40
codegen_flags: <defaults>
</compile_context>

<pallas_src>
import functools

import jax
import jax.numpy as jnp
from jax.experimental import pallas as pl
from jax.experimental.pallas import tpu as pltpu

IN_DIM = 28 * 28          # 784
OUT_DIM = 10
OUT_PAD = 128             # lane-dense padded output width
DEFAULT_TILE_B = 1024     # rows of x per grid step (multiple of 8)


def _round_up(x, m):
    return ((x + m - 1) // m) * m


def mlp_kernel(x_ref, w1_ref, b1_ref, w2_ref, b2_ref, o_ref):
    # Layer 1: (TILE_B, 784) @ (784, H) + (1, H), ReLU  -- f32 accumulate on MXU
    h = jnp.dot(x_ref[...], w1_ref[...], preferred_element_type=jnp.float32)
    h = jnp.maximum(h + b1_ref[...], 0.0)
    # Layer 2: (TILE_B, H) @ (H, 128) + (1, 128), ReLU  (cols 10..127 are zero pad)
    o = jnp.dot(h, w2_ref[...], preferred_element_type=jnp.float32)
    o_ref[...] = jnp.maximum(o + b2_ref[...], 0.0).astype(o_ref.dtype)


@functools.partial(jax.jit, static_argnames=("tile_b",))
def _backbone_call(x2d, w1, b1, w2p, b2p, *, tile_b):
    B_pad = x2d.shape[0]
    hidden = w1.shape[1]
    grid = (B_pad // tile_b,)

    cost = pl.CostEstimate(
        flops=2 * B_pad * (IN_DIM * hidden + hidden * OUT_PAD),
        transcendentals=0,
        bytes_accessed=4 * (B_pad * IN_DIM + IN_DIM * hidden + hidden
                            + hidden * OUT_PAD + OUT_PAD + B_pad * OUT_PAD),
    )

    return pl.pallas_call(
        mlp_kernel,
        out_shape=jax.ShapeDtypeStruct((B_pad, OUT_PAD), jnp.float32),
        grid=grid,
        in_specs=[
            # x: streamed per batch tile
            pl.BlockSpec((tile_b, IN_DIM), lambda i: (i, 0)),
            # weights / biases: full blocks, resident across all grid steps
            pl.BlockSpec((IN_DIM, hidden), lambda i: (0, 0)),
            pl.BlockSpec((1, hidden), lambda i: (0, 0)),
            pl.BlockSpec((hidden, OUT_PAD), lambda i: (0, 0)),
            pl.BlockSpec((1, OUT_PAD), lambda i: (0, 0)),
        ],
        out_specs=pl.BlockSpec((tile_b, OUT_PAD), lambda i: (i, 0)),
        compiler_params=pltpu.CompilerParams(
            dimension_semantics=("parallel",),
        ),
        cost_estimate=cost,
    )(x2d, w1, b1, w2p, b2p)


def backbone_forward(x_nchw, w1, b1, w2, b2, tile_b=DEFAULT_TILE_B):
    """x_nchw: (B, C, H, W) float32 with C*H*W == 784.

    Weights are stored transposed vs torch ((in, out) instead of (out, in)):
    the kernel computes y = x @ W + b directly on the MXU.
    """
    B = x_nchw.shape[0]
    x = x_nchw.reshape(B, -1).astype(jnp.float32)   # == torch x.view(B, -1)
    assert x.shape[1] == IN_DIM
    hidden = w1.shape[1]
    out_dim = w2.shape[1]
    assert out_dim <= OUT_PAD

    # Choose an effective tile and pad batch to a multiple of it.
    eff_tile = min(tile_b, _round_up(B, 8))
    eff_tile = _round_up(eff_tile, 8)
    B_pad = _round_up(B, eff_tile)
    if B_pad != B:
        x = jnp.pad(x, ((0, B_pad - B), (0, 0)))

    # Lane-dense output: zero-pad the second layer to 128 output columns.
    w2p = jnp.pad(w2, ((0, 0), (0, OUT_PAD - out_dim)))
    b2p = jnp.pad(b2.reshape(1, out_dim), ((0, 0), (0, OUT_PAD - out_dim)))
    b1r = b1.reshape(1, hidden)

    out_padded = _backbone_call(x, w1, b1r, w2p, b2p, tile_b=eff_tile)
    return out_padded[:B, :out_dim]


def init_params(key, hidden_dim=128):
    """Deterministic synthetic parameters (shapes match torch.nn.Linear)."""
    k1, k2, k3, k4 = jax.random.split(key, 4)
    w1 = jax.random.uniform(k1, (IN_DIM, hidden_dim), jnp.float32,
                            minval=-1.0, maxval=1.0) / jnp.sqrt(IN_DIM)
    b1 = jax.random.uniform(k2, (hidden_dim,), jnp.float32,
                            minval=-1.0, maxval=1.0) / jnp.sqrt(IN_DIM)
    w2 = jax.random.uniform(k3, (hidden_dim, OUT_DIM), jnp.float32,
                            minval=-1.0, maxval=1.0) / jnp.sqrt(hidden_dim)
    b2 = jax.random.uniform(k4, (OUT_DIM,), jnp.float32,
                            minval=-1.0, maxval=1.0) / jnp.sqrt(hidden_dim)
    return w1, b1, w2, b2


if __name__ == "__main__":
    key = jax.random.PRNGKey(0)
    kx, kp = jax.random.split(key)

    B, hidden_dim = 2, 128
    x = jax.random.normal(kx, (B, 1, 28, 28), jnp.float32)  # NCHW like torch
    w1, b1, w2, b2 = init_params(kp, hidden_dim)

    out = backbone_forward(x, w1, b1, w2, b2)
    out = jax.block_until_ready(out)

    # Reference check in plain JAX (same math).
    xf = x.reshape(B, -1)
    ref = jnp.maximum(jnp.maximum(xf @ w1 + b1, 0.0) @ w2 + b2, 0.0)
    assert out.shape == (B, OUT_DIM)
    assert jnp.allclose(out, ref, atol=1e-5, rtol=1e-5)

    # Also exercise a batch that is not a multiple of the tile (tail handling).
    B2 = 37
    x2 = jax.random.normal(kx, (B2, 1, 28, 28), jnp.float32)
    out2 = jax.block_until_ready(backbone_forward(x2, w1, b1, w2, b2))
    ref2 = jnp.maximum(
        jnp.maximum(x2.reshape(B2, -1) @ w1 + b1, 0.0) @ w2 + b2, 0.0)
    assert out2.shape == (B2, OUT_DIM)
    assert jnp.allclose(out2, ref2, atol=1e-5, rtol=1e-5)

    print("KERNEL_OK")
</pallas_src>

<mosaic_0001>
module attributes {stable_mosaic.version = 11 : i64} {
  func.func @mlp_kernel(%arg0: i32, %arg1: memref<8x784xf32, #tpu.memory_space<vmem>>, %arg2: memref<784x128xf32, #tpu.memory_space<vmem>>, %arg3: memref<1x128xf32, #tpu.memory_space<vmem>>, %arg4: memref<128x128xf32, #tpu.memory_space<vmem>>, %arg5: memref<1x128xf32, #tpu.memory_space<vmem>>, %arg6: memref<8x128xf32, #tpu.memory_space<vmem>>) attributes {dimension_semantics = [#tpu.dimension_semantics<parallel>], iteration_bounds = array<i64: 1>, scalar_prefetch = 0 : i64, scratch_operands = 0 : i64, tpu.core_type = #tpu.core_type<tc>, window_params = [{transform_indices = @transform_0, window_bounds = array<i64: 8, 784>}, {pipeline_mode = #tpu.pipeline_mode<synchronous>, transform_indices = @transform_1, window_bounds = array<i64: 784, 128>}, {pipeline_mode = #tpu.pipeline_mode<synchronous>, transform_indices = @transform_2, window_bounds = array<i64: 1, 128>}, {pipeline_mode = #tpu.pipeline_mode<synchronous>, transform_indices = @transform_3, window_bounds = array<i64: 128, 128>}, {pipeline_mode = #tpu.pipeline_mode<synchronous>, transform_indices = @transform_4, window_bounds = array<i64: 1, 128>}, {transform_indices = @transform_5, window_bounds = array<i64: 8, 128>}]} {
    %c0 = arith.constant 0 : index
    %c0_0 = arith.constant 0 : index
    %0 = vector.load %arg1[%c0, %c0_0] : memref<8x784xf32, #tpu.memory_space<vmem>>, vector<8x784xf32>
    %c0_1 = arith.constant 0 : index
    %c0_2 = arith.constant 0 : index
    %1 = vector.load %arg2[%c0_1, %c0_2] : memref<784x128xf32, #tpu.memory_space<vmem>>, vector<784x128xf32>
    %cst = arith.constant dense<0.000000e+00> : vector<8x128xf32>
    %2 = tpu.matmul %0, %1, %cst {dimension_numbers = #tpu.dot_dimension_numbers<[1], [0], [0], [1], [0, 0, 1, 1], [], []>} : vector<8x784xf32>, vector<784x128xf32>, vector<8x128xf32> -> vector<8x128xf32>
    %c0_3 = arith.constant 0 : index
    %c0_4 = arith.constant 0 : index
    %3 = vector.load %arg3[%c0_3, %c0_4] : memref<1x128xf32, #tpu.memory_space<vmem>>, vector<1x128xf32>
    %4 = vector.broadcast %3 : vector<1x128xf32> to vector<8x128xf32>
    %5 = arith.addf %2, %4 : vector<8x128xf32>
    %cst_5 = arith.constant 0.000000e+00 : f32
    %6 = vector.broadcast %cst_5 : f32 to vector<8x128xf32>
    %7 = arith.maximumf %5, %6 : vector<8x128xf32>
    %c0_6 = arith.constant 0 : index
    %c0_7 = arith.constant 0 : index
    %8 = vector.load %arg4[%c0_6, %c0_7] : memref<128x128xf32, #tpu.memory_space<vmem>>, vector<128x128xf32>
    %cst_8 = arith.constant dense<0.000000e+00> : vector<8x128xf32>
    %9 = tpu.matmul %7, %8, %cst_8 {dimension_numbers = #tpu.dot_dimension_numbers<[1], [0], [0], [1], [0, 0, 1, 1], [], []>} : vector<8x128xf32>, vector<128x128xf32>, vector<8x128xf32> -> vector<8x128xf32>
    %c0_9 = arith.constant 0 : index
    %c0_10 = arith.constant 0 : index
    %10 = vector.load %arg5[%c0_9, %c0_10] : memref<1x128xf32, #tpu.memory_space<vmem>>, vector<1x128xf32>
    %11 = vector.broadcast %10 : vector<1x128xf32> to vector<8x128xf32>
    %12 = arith.addf %9, %11 : vector<8x128xf32>
    %cst_11 = arith.constant 0.000000e+00 : f32
    %13 = vector.broadcast %cst_11 : f32 to vector<8x128xf32>
    %14 = arith.maximumf %12, %13 : vector<8x128xf32>
    %c0_12 = arith.constant 0 : index
    %c0_13 = arith.constant 0 : index
    %15 = vector.load %arg6[%c0_12, %c0_13] : memref<8x128xf32, #tpu.memory_space<vmem>>, vector<8x128xf32>
    tpu.vector_store %arg6[%c0_12, %c0_13], %14 {strides = array<i32>} : memref<8x128xf32, #tpu.memory_space<vmem>>, vector<8x128xf32>,
    return
  }
  func.func @transform_0(%arg0: i32) -> (i32, i32) {
    %c0_i32 = arith.constant 0 : i32
    %c0_i32_0 = arith.constant 0 : i32
    return %arg0, %c0_i32 : i32, i32
  }
  func.func @transform_1(%arg0: i32) -> (i32, i32) {
    %c0_i32 = arith.constant 0 : i32
    %c0_i32_0 = arith.constant 0 : i32
    %c0_i32_1 = arith.constant 0 : i32
    return %c0_i32, %c0_i32_0 : i32, i32
  }
  func.func @transform_2(%arg0: i32) -> (i32, i32) {
    %c0_i32 = arith.constant 0 : i32
    %c0_i32_0 = arith.constant 0 : i32
    %c0_i32_1 = arith.constant 0 : i32
    return %c0_i32, %c0_i32_0 : i32, i32
  }
  func.func @transform_3(%arg0: i32) -> (i32, i32) {
    %c0_i32 = arith.constant 0 : i32
    %c0_i32_0 = arith.constant 0 : i32
    %c0_i32_1 = arith.constant 0 : i32
    return %c0_i32, %c0_i32_0 : i32, i32
  }
  func.func @transform_4(%arg0: i32) -> (i32, i32) {
    %c0_i32 = arith.constant 0 : i32
    %c0_i32_0 = arith.constant 0 : i32
    %c0_i32_1 = arith.constant 0 : i32
    return %c0_i32, %c0_i32_0 : i32, i32
  }
  func.func @transform_5(%arg0: i32) -> (i32, i32) {
    %c0_i32 = arith.constant 0 : i32
    %c0_i32_0 = arith.constant 0 : i32
    return %arg0, %c0_i32 : i32, i32
  }
}

</mosaic_0001>

<bundles_post_ra>
// kernel: _backbone_call.1
= control target key start
LH: loop header
LB: loop body
LE: loop exit
PB: predicated region body
PF: predicated region fallthrough
CT: control target
= control target key end

     0   :  { %10 = vsyncpa [#allocation3], 0  ;;  %s908_s0 = inlined_call_operand.hbm [shape: f32[8,784], index: 0, kind: input, shape index: {}]   ;;  %s909_s1 = inlined_call_operand.hbm [shape: f32[784,128], index: 1, kind: input, shape index: {}]   ;;  %s910_s2 = inlined_call_operand.vmem [shape: f32[1,128], index: 2, kind: input, shape index: {}]   ;;  %s911_s3 = inlined_call_operand.hbm [shape: f32[128,128], index: 3, kind: input, shape index: {}]   ;;  %s912_s4 = inlined_call_operand.vmem [shape: f32[1,128], index: 4, kind: input, shape index: {}]   ;;  %s913_s5 = inlined_call_operand.hbm [shape: f32[8,128], index: 5, kind: output, shape index: {}]  }
   0x1   :  { %11 = vsyncpa [#allocation6], 0 }
   0x2   :  { %12 = vsyncpa [#allocation4], 0  ;;  %s832_s18 = smov [#allocation5]  }
   0x3   :  { %s28_s19 = sshll.u32 %s832_s18, 4  ;;  %s29_s19 = int_to_ptr.vmem [resolvable:$true] %s28_s19 }
   0x4   :  { %s754_s20 = scalar_lea.vmem %s29_s19, 12544  ;;  %p759_p1 = scmp.lt.s32.totalorder %s29_s19, %s29_s19 }
   0x5   :  { %p755_p0 = scmp.ne.s32.totalorder %s29_s19, %s754_s20  ;;  %p760_p2 = scmp.lt.s32.totalorder %s754_s20, %s754_s20 }
   0x7   :  { %p761_p3 = por %p760_p2, %p759_p1 }
   0x9   :  { %p762_p4 = pnand %p761_p3, %p755_p0 }
   0xb   :  { %765 = shalt.err (!%p762_p4)
}
   0xc   :  { %s833_s21 = smov 128   ;;  %s834_s22 = smov 8  }
   0xd   :  { %34 = dma.hbm_to_vmem [thread:$0]  %s909_s1, 12544, %s29_s19, [#allocation6], %s833_s21, %s833_s21, %s834_s22  }
   0xe   :  { %s835_s25 = smov [#allocation2]   ;;  %s836_s27 = smov [#allocation7]  }
   0xf   :  { %s19_s26 = sshll.u32 %s835_s25, 4  ;;  %s42_s28 = sshll.u32 %s836_s27, 4  ;;  %s20_s26 = int_to_ptr.vmem [resolvable:$true] %s19_s26  ;;  %s43_s28 = int_to_ptr.vmem [resolvable:$true] %s42_s28 }
  0x10   :  { %s774_s29 = scalar_lea.vmem %s20_s26, 896  ;;  %p779_p6 = scmp.lt.s32.totalorder %s20_s26, %s20_s26 }
  0x11   :  { %p775_p5 = scmp.ne.s32.totalorder %s20_s26, %s774_s29  ;;  %p780_p7 = scmp.lt.s32.totalorder %s774_s29, %s774_s29 }
  0x13   :  { %p781_p8 = por %p780_p7, %p779_p6 }
  0x15   :  { %p782_p9 = pnand %p781_p8, %p775_p5 }
  0x17   :  { %785 = shalt.err (!%p782_p9)
}
  0x18   :  { %22 = dma.hbm_to_vmem [thread:$0]  %s908_s0, 896, %s20_s26, [#allocation3]  }
  0x19   :  { %s794_s7 = scalar_lea.vmem %s43_s28, 2048  ;;  %p799_p11 = scmp.lt.s32.totalorder %s43_s28, %s43_s28 }
  0x1a   :  { %p795_p10 = scmp.ne.s32.totalorder %s43_s28, %s794_s7  ;;  %p800_p12 = scmp.lt.s32.totalorder %s794_s7, %s794_s7 }
  0x1c   :  { %p801_p13 = por %p800_p12, %p799_p11 }
  0x1e   :  { %p802_p0 = pnand %p801_p13, %p795_p10 }
  0x20   :  { %805 = shalt.err (!%p802_p0)
}
  0x21   :  { %48 = dma.hbm_to_vmem [thread:$0]  %s911_s3, 2048, %s43_s28, [#allocation6], %s833_s21, %s833_s21, %s834_s22  }
  0x22   :  { %826 = dma.done.wait [#allocation3], 896  }
  0x23   :  { %827 = vsyncadd [#allocation3], 4294966400 }
  0x24   :  { %828 = dma.done.wait [#allocation6], 14592  }
  0x25   :  { %829 = vsyncadd [#allocation6], 4294952704  ;;  %v98_v0 = vld [vmem:[#allocation5 + $0xf8] sm:$0xff]  ;;  %v97_v2 = vld [vmem:[#allocation5 + $0xf0] sm:$0xff]  ;;  %vm172_vm0 = vcmask 130048   ;;  %vm838_vm1 = vmmov 0  }
  0x26   :  { %v82_v1 = vld [vmem:[#allocation5 + $0x78] sm:$0xff]  ;;  %571 = vmatprep.subr.mxu0 %v98_v0  ;;  %v81_v4 = vld [vmem:[#allocation5 + $0x70] sm:$0xff]  ;;  %v96_v6 = vld [vmem:[#allocation5 + $0xe8] sm:$0xff]  ;;  %s839_s11 = smov [#allocation8]  }
  0x27   :  { %v130_v3 = vld [vmem:[#allocation5 + $0x1f8] sm:$0xff]  ;;  %572 = vmatpush3.msra.mxu0 %v82_v1  ;;  %v129_v7 = vld [vmem:[#allocation5 + $0x1f0] sm:$0xff]  ;;  %v80_v8 = vld [vmem:[#allocation5 + $0x68] sm:$0xff]  ;;  %s558_s12 = sshll.u32 %s839_s11, 4  ;;  %s559_s12 = int_to_ptr.vmem [resolvable:$true] %s558_s12 }
  0x28   :  { %v114_v5 = vld [vmem:[#allocation5 + $0x178] sm:$0xff]  ;;  %606 = vmatprep.subr.mxu1 %v130_v3  ;;  %573 = vmatprep.subr.mxu0 %v97_v2  ;;  %v113_v9 = vld [vmem:[#allocation5 + $0x170] sm:$0xff]  ;;  %v128_v10 = vld [vmem:[#allocation5 + $0x1e8] sm:$0xff]  ;;  %p811_p2 = scmp.lt.s32.totalorder %s559_s12, %s559_s12 }
  0x29   :  { %607 = vmatpush3.msra.mxu1 %v114_v5  ;;  %574 = vmatpush3.msra.mxu0 %v81_v4  ;;  %v95_v11 = vld [vmem:[#allocation5 + $0xe0] sm:$0xff]  ;;  %v112_v12 = vld [vmem:[#allocation5 + $0x168] sm:$0xff]  ;;  %v94_v15 = vld [vmem:[#allocation5 + $0xd8] sm:$0xff] }
  0x2a   :  { %608 = vmatprep.subr.mxu1 %v129_v7  ;;  %575 = vmatprep.subr.mxu0 %v96_v6  ;;  %v79_v13 = vld [vmem:[#allocation5 + $0x60] sm:$0xff]  ;;  %v78_v17 = vld [vmem:[#allocation5 + $0x58] sm:$0xff]  ;;  %v93_v19 = vld [vmem:[#allocation5 + $0xd0] sm:$0xff] }
  0x2b   :  { %609 = vmatpush3.msra.mxu1 %v113_v9  ;;  %v127_v14 = vld [vmem:[#allocation5 + $0x1e0] sm:$0xff]  ;;  %576 = vmatpush3.msra.mxu0 %v80_v8  ;;  %v126_v18 = vld [vmem:[#allocation5 + $0x1d8] sm:$0xff]  ;;  %v77_v21 = vld [vmem:[#allocation5 + $0x50] sm:$0xff] }
  0x2c   :  { %610 = vmatprep.subr.mxu1 %v128_v10  ;;  %v111_v16 = vld [vmem:[#allocation5 + $0x160] sm:$0xff]  ;;  %577 = vmatprep.subr.mxu0 %v95_v11  ;;  %v110_v20 = vld [vmem:[#allocation5 + $0x158] sm:$0xff]  ;;  %v125_v22 = vld [vmem:[#allocation5 + $0x1d0] sm:$0xff] }
  0x2d   :  { %611 = vmatpush3.msra.mxu1 %v112_v12  ;;  %578 = vmatpush3.msra.mxu0 %v79_v13  ;;  %v92_v23 = vld [vmem:[#allocation5 + $0xc8] sm:$0xff]  ;;  %v109_v24 = vld [vmem:[#allocation5 + $0x150] sm:$0xff]  ;;  %v91_v27 = vld [vmem:[#allocation5 + $0xc0] sm:$0xff] }
  0x2e   :  { %612 = vmatprep.subr.mxu1 %v127_v14  ;;  %579 = vmatprep.subr.mxu0 %v94_v15  ;;  %v76_v25 = vld [vmem:[#allocation5 + $0x48] sm:$0xff]  ;;  %v75_v29 = vld [vmem:[#allocation5 + $0x40] sm:$0xff]  ;;  %v90_v31 = vld [vmem:[#allocation5 + $0xb8] sm:$0xff]  ;;  %v837_v14 = vmov 0.0  }
  0x2f   :  { %613 = vmatpush3.msra.mxu1 %v111_v16  ;;  %580 = vmatpush3.msra.mxu0 %v78_v17  ;;  %v124_v26 = vld [vmem:[#allocation5 + $0x1c8] sm:$0xff]  ;;  %v123_v30 = vld [vmem:[#allocation5 + $0x1c0] sm:$0xff]  ;;  %v74_v33 = vld [vmem:[#allocation5 + $0x38] sm:$0xff] }
  0x30   :  { %614 = vmatprep.subr.mxu1 %v126_v18  ;;  %581 = vmatprep.subr.mxu0 %v93_v19  ;;  %v108_v28 = vld [vmem:[#allocation5 + $0x148] sm:$0xff]  ;;  %v107_v32 = vld [vmem:[#allocation5 + $0x140] sm:$0xff]  ;;  %v122_v34 = vld [vmem:[#allocation5 + $0x1b8] sm:$0xff] }
  0x31   :  { %615 = vmatpush3.msra.mxu1 %v110_v20  ;;  %582 = vmatpush3.msra.mxu0 %v77_v21  ;;  %v89_v35 = vld [vmem:[#allocation5 + $0xb0] sm:$0xff]  ;;  %v106_v36 = vld [vmem:[#allocation5 + $0x138] sm:$0xff]  ;;  %v88_v39 = vld [vmem:[#allocation5 + $0xa8] sm:$0xff] }
  0x32   :  { %616 = vmatprep.subr.mxu1 %v125_v22  ;;  %583 = vmatprep.subr.mxu0 %v92_v23  ;;  %v73_v37 = vld [vmem:[#allocation5 + $0x30] sm:$0xff]  ;;  %v72_v41 = vld [vmem:[#allocation5 + $0x28] sm:$0xff]  ;;  %v87_v43 = vld [vmem:[#allocation5 + $0xa0] sm:$0xff] }
  0x33   :  { %617 = vmatpush3.msra.mxu1 %v109_v24  ;;  %584 = vmatpush3.msra.mxu0 %v76_v25  ;;  %v121_v38 = vld [vmem:[#allocation5 + $0x1b0] sm:$0xff]  ;;  %v120_v42 = vld [vmem:[#allocation5 + $0x1a8] sm:$0xff]  ;;  %v71_v45 = vld [vmem:[#allocation5 + $0x20] sm:$0xff] }
  0x34   :  { %618 = vmatprep.subr.mxu1 %v124_v26  ;;  %585 = vmatprep.subr.mxu0 %v91_v27  ;;  %v105_v40 = vld [vmem:[#allocation5 + $0x130] sm:$0xff]  ;;  %v104_v44 = vld [vmem:[#allocation5 + $0x128] sm:$0xff]  ;;  %v119_v46 = vld [vmem:[#allocation5 + $0x1a0] sm:$0xff] }
  0x35   :  { %619 = vmatpush3.msra.mxu1 %v108_v28  ;;  %586 = vmatpush3.msra.mxu0 %v75_v29  ;;  %v86_v47 = vld [vmem:[#allocation5 + $0x98] sm:$0xff]  ;;  %v103_v48 = vld [vmem:[#allocation5 + $0x120] sm:$0xff]  ;;  %v85_v51 = vld [vmem:[#allocation5 + $0x90] sm:$0xff] }
  0x36   :  { %620 = vmatprep.subr.mxu1 %v123_v30  ;;  %587 = vmatprep.subr.mxu0 %v90_v31  ;;  %v70_v49 = vld [vmem:[#allocation5 + $0x18] sm:$0xff]  ;;  %v69_v53 = vld [vmem:[#allocation5 + $0x10] sm:$0xff]  ;;  %v84_v55 = vld [vmem:[#allocation5 + $0x88] sm:$0xff] }
  0x37   :  { %621 = vmatpush3.msra.mxu1 %v107_v32  ;;  %588 = vmatpush3.msra.mxu0 %v74_v33  ;;  %v118_v50 = vld [vmem:[#allocation5 + $0x198] sm:$0xff]  ;;  %v117_v54 = vld [vmem:[#allocation5 + $0x190] sm:$0xff]  ;;  %v68_v57 = vld [vmem:[#allocation5 + $0x8] sm:$0xff] }
  0x38   :  { %622 = vmatprep.subr.mxu1 %v122_v34  ;;  %589 = vmatprep.subr.mxu0 %v89_v35  ;;  %v102_v52 = vld [vmem:[#allocation5 + $0x118] sm:$0xff]  ;;  %v101_v56 = vld [vmem:[#allocation5 + $0x110] sm:$0xff]  ;;  %v116_v58 = vld [vmem:[#allocation5 + $0x188] sm:$0xff] }
  0x39   :  { %623 = vmatpush3.msra.mxu1 %v106_v36  ;;  %590 = vmatpush3.msra.mxu0 %v73_v37  ;;  %v83_v59 = vld [vmem:[#allocation5 + $0x80] sm:$0xff]  ;;  %v61_v60 = vld [vmem:[#allocation2 + $0x8] sm:$0xff]  ;;  %v100_v62 = vld [vmem:[#allocation5 + $0x108] sm:$0xff] }
  0x3a   :  { %624 = vmatprep.subr.mxu1 %v121_v38  ;;  %591 = vmatprep.subr.mxu0 %v88_v39  ;;  %v67_v61 = vld [vmem:[#allocation5] sm:$0xff]  ;;  %v60_v63 = vld [vmem:[#allocation2] sm:$0xff]  ;;  %v162_v1 = vld [vmem:[#allocation5 + $0x2f8] sm:$0xff] }
  0x3b   :  { %625 = vmatpush3.msra.mxu1 %v105_v40  ;;  %592 = vmatpush3.msra.mxu0 %v72_v41  ;;  %v115_v0 = vld [vmem:[#allocation5 + $0x180] sm:$0xff]  ;;  %v146_v4 = vld [vmem:[#allocation5 + $0x278] sm:$0xff]  ;;  %v161_v6 = vld [vmem:[#allocation5 + $0x2f0] sm:$0xff] }
  0x3c   :  { %626 = vmatprep.subr.mxu1 %v120_v42  ;;  %593 = vmatprep.subr.mxu0 %v87_v43  ;;  %v99_v2 = vld [vmem:[#allocation5 + $0x100] sm:$0xff]  ;;  %v62_v5 = vld [vmem:[#allocation2 + $0x10] sm:$0xff]  ;;  %v145_v7 = vld [vmem:[#allocation5 + $0x270] sm:$0xff] }
  0x3d   :  { %627 = vmatpush3.msra.mxu1 %v104_v44  ;;  %594 = vmatpush3.msra.mxu0 %v71_v45  ;;  %v63_v3 = vld [vmem:[#allocation2 + $0x18] sm:$0xff]  ;;  %v65_v8 = vld [vmem:[#allocation2 + $0x28] sm:$0xff]  ;;  %v160_v9 = vld [vmem:[#allocation5 + $0x2e8] sm:$0xff] }
  0x3e   :  { %628 = vmatprep.subr.mxu1 %v119_v46  ;;  %595 = vmatprep.subr.mxu0 %v86_v47  ;;  %v144_v10 = vld [vmem:[#allocation5 + $0x268] sm:$0xff]  ;;  %v159_v12 = vld [vmem:[#allocation5 + $0x2e0] sm:$0xff]  ;;  %v158_v16 = vld [vmem:[#allocation5 + $0x2d8] sm:$0xff] }
  0x3f   :  { %629 = vmatpush3.msra.mxu1 %v103_v48  ;;  %596 = vmatpush3.msra.mxu0 %v70_v49  ;;  %v164_v11 = vld [vmem:[#allocation5 + $0x308] sm:$0xff]  ;;  %v143_v13 = vld [vmem:[#allocation5 + $0x260] sm:$0xff]  ;;  %v142_v17 = vld [vmem:[#allocation5 + $0x258] sm:$0xff] }
  0x40   :  { %630 = vmatprep.subr.mxu1 %v118_v50  ;;  %597 = vmatprep.subr.mxu0 %v85_v51  ;;  %v163_v15 = vld [vmem:[#allocation5 + $0x300] sm:$0xff]  ;;  %v66_v18 = vld [vmem:[#allocation2 + $0x30] sm:$0xff]  ;;  %v157_v19 = vld [vmem:[#allocation5 + $0x2d0] sm:$0xff] }
  0x41   :  { %631 = vmatpush3.msra.mxu1 %v102_v52  ;;  %598 = vmatpush3.msra.mxu0 %v69_v53  ;;  %v141_v20 = vld [vmem:[#allocation5 + $0x250] sm:$0xff]  ;;  %v156_v21 = vld [vmem:[#allocation5 + $0x2c8] sm:$0xff]  ;;  %v155_v23 = vld [vmem:[#allocation5 + $0x2c0] sm:$0xff] }
  0x42   :  { %632 = vmatprep.subr.mxu1 %v117_v54  ;;  %599 = vmatprep.subr.mxu0 %v84_v55  ;;  %v140_v22 = vld [vmem:[#allocation5 + $0x248] sm:$0xff]  ;;  %v139_v24 = vld [vmem:[#allocation5 + $0x240] sm:$0xff]  ;;  %v154_v25 = vld [vmem:[#allocation5 + $0x2b8] sm:$0xff] }
  0x43   :  { %633 = vmatpush3.msra.mxu1 %v101_v56  ;;  %600 = vmatpush3.msra.mxu0 %v68_v57  ;;  %v138_v26 = vld [vmem:[#allocation5 + $0x238] sm:$0xff]  ;;  %v153_v27 = vld [vmem:[#allocation5 + $0x2b0] sm:$0xff]  ;;  %v152_v29 = vld [vmem:[#allocation5 + $0x2a8] sm:$0xff] }
  0x44   :  { %634 = vmatprep.subr.mxu1 %v116_v58  ;;  %601 = vmatprep.subr.mxu0 %v83_v59  ;;  %v137_v28 = vld [vmem:[#allocation5 + $0x230] sm:$0xff]  ;;  %v136_v30 = vld [vmem:[#allocation5 + $0x228] sm:$0xff]  ;;  %v151_v31 = vld [vmem:[#allocation5 + $0x2a0] sm:$0xff] }
  0x45   :  { %240 = vmatprep.mubr.f32.mxu0 %v61_v60  ;;  %602 = vmatpush3.msra.mxu0 %v67_v61  ;;  %v135_v32 = vld [vmem:[#allocation5 + $0x220] sm:$0xff]  ;;  %v150_v33 = vld [vmem:[#allocation5 + $0x298] sm:$0xff]  ;;  %v149_v35 = vld [vmem:[#allocation5 + $0x290] sm:$0xff] }
  0x46   :  { %635 = vmatpush3.msra.mxu1 %v100_v62  ;;  %241 = vmatmul.mubr.f32.vlgmr.msra.gmra.mxu0 %v60_v63  ;;  %v134_v34 = vld [vmem:[#allocation5 + $0x218] sm:$0xff]  ;;  %v133_v36 = vld [vmem:[#allocation5 + $0x210] sm:$0xff]  ;;  %v148_v37 = vld [vmem:[#allocation5 + $0x288] sm:$0xff] }
  0x47   :  { %636 = vmatprep.subr.mxu1 %v115_v0  ;;  %641 = vmatprep.subr.mxu0 %v162_v1  ;;  %v132_v38 = vld [vmem:[#allocation5 + $0x208] sm:$0xff]  ;;  %v147_v39 = vld [vmem:[#allocation5 + $0x280] sm:$0xff]  ;;  %v470_v44 = vld [vmem:[#allocation7 + $0x68] sm:$0xff] }
  0x48   :  { %637 = vmatpush3.msra.mxu1 %v99_v2  ;;  %310 = vmatprep.mubr.f32.mxu1 %v63_v3  ;;  %v131_v40 = vld [vmem:[#allocation5 + $0x200] sm:$0xff]  ;;  %v64_v41 = vld [vmem:[#allocation2 + $0x20] sm:$0xff]  ;;  %v469_v45 = vld [vmem:[#allocation7 + $0x60] sm:$0xff] }
  0x49   :  { %642 = vmatpush3.msra.mxu0 %v146_v4  ;;  %311 = vmatmul.mubr.f32.vlgmr.msra.gmra.mxu1 %v62_v5  ;;  %v472_v42 = vld [vmem:[#allocation7 + $0x78] sm:$0xff]  ;;  %v471_v43 = vld [vmem:[#allocation7 + $0x70] sm:$0xff]  ;;  %v466_v48 = vld [vmem:[#allocation7 + $0x48] sm:$0xff] }
  0x4a   :  { %643 = vmatprep.subr.mxu0 %v161_v6  ;;  %380 = vmatprep.mubr.f32.mxu0 %v65_v8  ;;  %v468_v46 = vld [vmem:[#allocation7 + $0x58] sm:$0xff]  ;;  %v467_v47 = vld [vmem:[#allocation7 + $0x50] sm:$0xff]  ;;  %v465_v49 = vld [vmem:[#allocation7 + $0x40] sm:$0xff] }
  0x4b   :  { %644 = vmatpush3.msra.mxu0 %v145_v7  ;;  %696 = vmatprep.subr.mxu1 %v837_v14  ;;  %v464_v50 = vld [vmem:[#allocation7 + $0x38] sm:$0xff]  ;;  %v463_v51 = vld [vmem:[#allocation7 + $0x30] sm:$0xff]  ;;  %v462_v52 = vld [vmem:[#allocation7 + $0x28] sm:$0xff] }
  0x4c   :  { %645 = vmatprep.subr.mxu0 %v160_v9  ;;  %697 = vmatpush3.msra.mxu1 %v164_v11  ;;  %v461_v53 = vld [vmem:[#allocation7 + $0x20] sm:$0xff]  ;;  %v460_v54 = vld [vmem:[#allocation7 + $0x18] sm:$0xff]  ;;  %v459_v55 = vld [vmem:[#allocation7 + $0x10] sm:$0xff] }
  0x4d   :  { %646 = vmatpush3.msra.mxu0 %v144_v10  ;;  %698 = vmatprep.subr.mxu1 %v837_v14  ;;  %v458_v56 = vld [vmem:[#allocation7 + $0x8] sm:$0xff]  ;;  %v457_v57 = vld [vmem:[#allocation7] sm:$0xff]  ;;  %v568_v1 = vld [vmem:[%s910_s2] ss:$0 sm:$0xff]  ;;  %s806_s2 = scalar_lea.vmem %s559_s12, 128 }
  0x4e   :  { %647 = vmatprep.subr.mxu0 %v159_v12  ;;  %699 = vmatpush3.msra.mxu1 %v163_v15  ;;  %v570_v11 = vld [vmem:[%s912_s4] ss:$0 sm:$0xff]  ;;  %p807_p1 = scmp.ne.s32.totalorder %s559_s12, %s806_s2  ;;  %p812_p3 = scmp.lt.s32.totalorder %s806_s2, %s806_s2 }
  0x4f   :  { %648 = vmatpush3.msra.mxu0 %v143_v13  ;;  %700 = vmatprep.mubr.msk.f32.mxu1 %vm838_vm1, %v837_v14 }
  0x50   :  { %649 = vmatprep.subr.mxu0 %v158_v16  ;;  %701 = vmatmul.mubr.msk.f32.vlgmr.msra.gmra.mxu1 %vm172_vm0, %v66_v18  ;;  %p813_p4 = por %p812_p3, %p811_p2 }
  0x51   :  { %650 = vmatpush3.msra.mxu0 %v142_v17  ;;  %703 = vmatprep.subr.mxu1 %v837_v14 }
  0x52   :  { %651 = vmatprep.subr.mxu0 %v157_v19  ;;  %735 = vmatprep.mubr.msk.f32.mxu1 %vm838_vm1, %v837_v14  ;;  %p814_p5 = pnand %p813_p4, %p807_p1 }
  0x53   :  { %652 = vmatpush3.msra.mxu0 %v141_v20  ;;  %704 = vmatpush3.msra.mxu1 %v472_v42 }
  0x54   :  { %653 = vmatprep.subr.mxu0 %v156_v21  ;;  %705 = vmatprep.subr.mxu1 %v837_v14 }
  0x55   :  { %654 = vmatpush3.msra.mxu0 %v140_v22  ;;  %706 = vmatpush3.msra.mxu1 %v471_v43 }
  0x56   :  { %655 = vmatprep.subr.mxu0 %v155_v23  ;;  %707 = vmatprep.subr.mxu1 %v837_v14 }
  0x57   :  { %656 = vmatpush3.msra.mxu0 %v139_v24  ;;  %708 = vmatpush3.msra.mxu1 %v470_v44 }
  0x58   :  { %657 = vmatprep.subr.mxu0 %v154_v25  ;;  %709 = vmatprep.subr.mxu1 %v837_v14 }
  0x59   :  { %658 = vmatpush3.msra.mxu0 %v138_v26  ;;  %710 = vmatpush3.msra.mxu1 %v469_v45 }
  0x5a   :  { %659 = vmatprep.subr.mxu0 %v153_v27  ;;  %711 = vmatprep.subr.mxu1 %v837_v14 }
  0x5b   :  { %660 = vmatpush3.msra.mxu0 %v137_v28  ;;  %712 = vmatpush3.msra.mxu1 %v468_v46 }
  0x5c   :  { %661 = vmatprep.subr.mxu0 %v152_v29  ;;  %713 = vmatprep.subr.mxu1 %v837_v14 }
  0x5d   :  { %662 = vmatpush3.msra.mxu0 %v136_v30  ;;  %714 = vmatpush3.msra.mxu1 %v467_v47 }
  0x5e   :  { %663 = vmatprep.subr.mxu0 %v151_v31  ;;  %715 = vmatprep.subr.mxu1 %v837_v14 }
  0x5f   :  { %664 = vmatpush3.msra.mxu0 %v135_v32  ;;  %716 = vmatpush3.msra.mxu1 %v466_v48 }
  0x60   :  { %665 = vmatprep.subr.mxu0 %v150_v33  ;;  %717 = vmatprep.subr.mxu1 %v837_v14 }
  0x61   :  { %666 = vmatpush3.msra.mxu0 %v134_v34  ;;  %718 = vmatpush3.msra.mxu1 %v465_v49 }
  0x62   :  { %667 = vmatprep.subr.mxu0 %v149_v35  ;;  %719 = vmatprep.subr.mxu1 %v837_v14 }
  0x63   :  { %668 = vmatpush3.msra.mxu0 %v133_v36  ;;  %720 = vmatpush3.msra.mxu1 %v464_v50 }
  0x64   :  { %669 = vmatprep.subr.mxu0 %v148_v37  ;;  %721 = vmatprep.subr.mxu1 %v837_v14 }
  0x65   :  { %670 = vmatpush3.msra.mxu0 %v132_v38  ;;  %722 = vmatpush3.msra.mxu1 %v463_v51 }
  0x66   :  { %671 = vmatprep.subr.mxu0 %v147_v39  ;;  %723 = vmatprep.subr.mxu1 %v837_v14 }
  0x67   :  { %672 = vmatpush3.msra.mxu0 %v131_v40  ;;  %724 = vmatpush3.msra.mxu1 %v462_v52 }
  0x68   :  { %381 = vmatmul.mubr.f32.vlgmr.msra.gmra.mxu0 %v64_v41  ;;  %725 = vmatprep.subr.mxu1 %v837_v14 }
  0x69   :  { %726 = vmatpush3.msra.mxu1 %v461_v53 }
  0x6a   :  { %727 = vmatprep.subr.mxu1 %v837_v14 }
  0x6b   :  { %728 = vmatpush3.msra.mxu1 %v460_v54 }
  0x6c   :  { %729 = vmatprep.subr.mxu1 %v837_v14 }
  0x6d   :  { %730 = vmatpush3.msra.mxu1 %v459_v55 }
  0x6e   :  { %731 = vmatprep.subr.mxu1 %v837_v14 }
  0x6f   :  { %732 = vmatpush3.msra.mxu1 %v458_v56 }
  0x70   :  { %733 = vmatprep.subr.mxu1 %v837_v14 }
  0x71   :  { %734 = vmatpush3.msra.mxu1 %v457_v57 }
 0x106   :  { %v603_v62 = vpop.f32.mrf.mxu0 }
 0x108   :  { %v604_v63 = vpop.f32.mrf.mxu0 }
 0x109   :  { %v638_v58 = vpop.f32.mrf.mxu1  ;;  %v605_v0 = vadd.f32 %v604_v63, %v603_v62 }
 0x10b   :  { %v639_v59 = vpop.f32.mrf.mxu1  ;;  %v243_v2 = vadd.f32 %v605_v0, %v568_v1 }
 0x10c   :  { %v640_v3 = vadd.f32 %v639_v59, %v638_v58 }
 0x10e   :  { %v313_v6 = vadd.f32 %v640_v3, %v243_v2 }
 0x110   :  { %v452_v60 = vpop.f32.mrf.mxu1 }
 0x112   :  { %v702_v61 = vpop.f32.mrf.mxu1 }
 0x128   :  { %v673_v4 = vpop.f32.mrf.mxu0 }
 0x12a   :  { %v674_v5 = vpop.f32.mrf.mxu0 }
 0x12b   :  { %v675_v7 = vadd.f32 %v674_v5, %v673_v4 }
 0x12d   :  { %v383_v8 = vadd.f32 %v675_v7, %v313_v6 }
 0x12f   :  { %v453_v9 = vadd.f32 %v452_v60, %v383_v8 }
 0x131   :  { %v456_v10 = vmax.f32 %v453_v9, 0.0 }
 0x133   :  { %736 = vmatmul.mubr.f32.vlgmr.msra.gmra.mxu1 %v456_v10 }
 0x1f3   :  { %v546_v12 = vpop.f32.mrf.mxu1 }
 0x1f4   :  { %v547_v13 = vadd.f32 %v570_v11, %v546_v12 }
 0x1f5   :  { %v737_v14 = vpop.f32.mrf.mxu1 }
 0x1f6   :  { %v550_v15 = vmax.f32 %v547_v13, 0.0 }
 0x1f8   :  { %551 = vst [vmem:[#allocation8] sm:$0xff] %v550_v15 }
 0x1f9   :  { %817 = shalt.err (!%p814_p5)
}
 0x1fa   :  { %561 = dma.vmem_to_hbm [thread:$0]  %s559_s12, 128, %s913_s5, [#allocation4]  }
 0x1fb   :  { %830 = dma.done.wait [#allocation4], 128  }
 0x1fc   :  { %831 = vsyncadd [#allocation4], 4294967168 }
 0x1fd   :  { %565 = vsyncpa [#allocation3], 1 }
 0x1fe   :  { %566 = vsyncpa [#allocation6], 1 }
 0x1ff   :  { %567 = vsyncpa [#allocation4], 1 }

</bundles_post_ra>
